<compile_context>
chip_gen: v5e
topology: v5e:2x2
jax: 0.10.0
libtpu: 0.0.40
codegen_flags: <defaults>
</compile_context>

<pallas_src>
import numpy as np
import jax
import jax.numpy as jnp
from jax.experimental import pallas as pl
from jax.experimental.pallas import tpu as pltpu


def _round_up(x, m):
    return ((x + m - 1) // m) * m


def _cdiv(a, b):
    return -(-a // b)


def _linspace(backcast_length, forecast_length):
    lin = np.linspace(-backcast_length, forecast_length,
                      backcast_length + forecast_length)
    return lin[:backcast_length], lin[backcast_length:]


def _seasonality_basis(thetas_dim, t):
    p = thetas_dim
    p1, p2 = (p // 2, p // 2) if p % 2 == 0 else (p // 2, p // 2 + 1)
    s1 = np.stack([np.cos(2 * np.pi * i * t) for i in range(p1)]) if p1 > 0 \
        else np.zeros((0, len(t)))
    s2 = np.stack([np.sin(2 * np.pi * i * t) for i in range(p2)])
    return np.concatenate([s1, s2], axis=0).astype(np.float32)   # (p, len(t))


def seasonality_block_kernel(x_ref,
                             w1_ref, b1_ref, w2_ref, b2_ref,
                             w3_ref, b3_ref, w4_ref, b4_ref,
                             wbasis_ref,
                             out_ref):
    # fc1..fc4: bf16 operands on the MXU, f32 accumulate, bias/ReLU in f32.
    h = jnp.dot(x_ref[...], w1_ref[...], preferred_element_type=jnp.float32)
    h = jnp.maximum(h + b1_ref[...], 0.0).astype(jnp.bfloat16)
    h = jnp.dot(h, w2_ref[...], preferred_element_type=jnp.float32)
    h = jnp.maximum(h + b2_ref[...], 0.0).astype(jnp.bfloat16)
    h = jnp.dot(h, w3_ref[...], preferred_element_type=jnp.float32)
    h = jnp.maximum(h + b3_ref[...], 0.0).astype(jnp.bfloat16)
    h = jnp.dot(h, w4_ref[...], preferred_element_type=jnp.float32)
    h = jnp.maximum(h + b4_ref[...], 0.0).astype(jnp.bfloat16)
    # Folded (theta projection @ seasonality basis): one matmul, one wide
    # bf16 store (halves masked-vst count + output writeback vs f32).
    out_ref[...] = jnp.dot(h, wbasis_ref[...],
                           preferred_element_type=jnp.float32
                           ).astype(jnp.bfloat16)


def seasonality_block_forward(x, params, S_back, S_fore, *, tile_b=4096):
    """Returns (backcast, forecast) for the N-BEATS SeasonalityBlock."""
    B, Lb = x.shape
    U = params["w1"].shape[1]
    Lf = S_fore.shape[1]
    Lo = Lb + Lf

    # Fold the shared, bias-free theta projection into the basis matmuls
    # (exact up to rounding order):  out = h @ (Wtheta @ [S_back | S_fore]).
    w_fused = jnp.concatenate(
        [params["wt"] @ S_back, params["wt"] @ S_fore], axis=1)      # (U, Lo) f32

    # --- Sample packing: P samples per MXU row via block-diagonal weights ---
    P = 1 if U >= 128 else max(1, 128 // U)
    eye_p = jnp.eye(P, dtype=jnp.float32)

    def bdiag_bf16(w):               # (K, N) -> (P*K, P*N) block-diag, bf16
        return jnp.kron(eye_p, w.astype(jnp.float32)).astype(jnp.bfloat16)

    def tiled_bias(b):               # (1, N) -> (1, P*N), f32
        return jnp.tile(b.astype(jnp.float32), (1, P))

    w1, w2, w3, w4 = (bdiag_bf16(params[k]) for k in ("w1", "w2", "w3", "w4"))
    b1, b2, b3, b4 = (tiled_bias(params[k]) for k in ("b1", "b2", "b3", "b4"))
    wf = bdiag_bf16(w_fused)

    Kin, N, No = P * Lb, P * U, P * Lo       # packed feature widths
    n_rows = _cdiv(B, P)                      # packed batch rows (pre-padding)

    # --- Packed-row tile size ---
    # Start from the requested per-sample tile, round to a multiple of 8.
    t = _round_up(min(max(1, tile_b // P), max(n_rows, 8)), 8)
    # v7x dual-TC: keep >=2 grid steps whenever there is enough work to split.
    if n_rows > 8:
        t = min(t, _round_up(_cdiv(n_rows, 2), 8))
    # VMEM cap: double-buffered x+out tiles + the live f32 activation, budgeted
    # conservatively (~12 MiB) so it fits every chip's scoped default.
    per_row_bytes = 2 * (Kin * 2 + No * 2) + 4 * N
    max_rows = max(8, ((12 * 1024 * 1024) // per_row_bytes) // 8 * 8)
    t = min(t, max_rows)

    rows_pad = _round_up(n_rows, t)
    B_pad = rows_pad * P
    x_p = x if B_pad == B else jnp.pad(x, ((0, B_pad - B), (0, 0)))
    x_p = x_p.reshape(rows_pad, Kin).astype(jnp.bfloat16)
    grid = (rows_pad // t,)

    # NOTE(perf): constant-index-map weights could carry pipeline_mode=
    # pl.Buffered(1); Mosaic already elides their re-DMA and at these sizes the
    # extra buffer copy is negligible, so we keep the default.
    def const_spec(shape):
        return pl.BlockSpec(shape, lambda i: (0, 0))   # VMEM-resident weights

    in_specs = [
        pl.BlockSpec((t, Kin), lambda i: (i, 0)),      # packed x tile
        const_spec((Kin, N)), const_spec((1, N)),      # fc1
        const_spec((N, N)), const_spec((1, N)),        # fc2
        const_spec((N, N)), const_spec((1, N)),        # fc3
        const_spec((N, N)), const_spec((1, N)),        # fc4
        const_spec((N, No)),                           # fused theta/basis weight
    ]
    out_specs = pl.BlockSpec((t, No), lambda i: (i, 0))

    flops = 2 * rows_pad * (Kin * N + 3 * N * N + N * No)
    bytes_accessed = (rows_pad * Kin * 2                        # x (bf16)
                      + (Kin * N + 3 * N * N + N * No) * 2      # weights (bf16)
                      + 4 * N * 4                               # biases (f32)
                      + rows_pad * No * 2)                      # output (bf16)
    cost = pl.CostEstimate(flops=flops, transcendentals=0,
                           bytes_accessed=bytes_accessed)

    out = pl.pallas_call(
        seasonality_block_kernel,
        out_shape=jax.ShapeDtypeStruct((rows_pad, No), jnp.bfloat16),
        grid=grid,
        in_specs=in_specs,
        out_specs=out_specs,
        compiler_params=pltpu.CompilerParams(
            dimension_semantics=("parallel",),          # shard batch over TCs
            vmem_limit_bytes=32 * 1024 * 1024),         # > v5e's 16 MiB default
        cost_estimate=cost,
    )(x_p, w1, b1, w2, b2, w3, b3, w4, b4, wf)

    out = out.reshape(B_pad, Lo)[:B].astype(jnp.float32)
    return out[:, :Lb], out[:, Lb:]


def _ref_forward(x, params, S_back, S_fore):
    # Pure f32 reference matching the PyTorch module exactly.
    h = jax.nn.relu(x @ params["w1"] + params["b1"])
    h = jax.nn.relu(h @ params["w2"] + params["b2"])
    h = jax.nn.relu(h @ params["w3"] + params["b3"])
    h = jax.nn.relu(h @ params["w4"] + params["b4"])
    thetas = h @ params["wt"]
    return thetas @ S_back, thetas @ S_fore


if __name__ == "__main__":
    # SeasonalityBlock(units, thetas_dim, ...) with nb_harmonics=None
    # -> thetas_dim = forecast_length, share_thetas=True.
    B = 37                      # not a multiple of 4: exercises pack + pad + 2-step grid
    backcast_length = 10
    forecast_length = 5
    units = 32
    thetas_dim = forecast_length

    key = jax.random.PRNGKey(0)
    ks = jax.random.split(key, 11)

    def lin_init(kw, kb, fan_in, fan_out, bias=True):
        bound = 1.0 / np.sqrt(fan_in)
        w = jax.random.uniform(kw, (fan_in, fan_out), jnp.float32, -bound, bound)
        if not bias:
            return w, None
        b = jax.random.uniform(kb, (1, fan_out), jnp.float32, -bound, bound)
        return w, b

    w1, b1 = lin_init(ks[0], ks[1], backcast_length, units)
    w2, b2 = lin_init(ks[2], ks[3], units, units)
    w3, b3 = lin_init(ks[4], ks[5], units, units)
    w4, b4 = lin_init(ks[6], ks[7], units, units)
    wt, _ = lin_init(ks[8], ks[9], units, thetas_dim, bias=False)

    params = dict(w1=w1, b1=b1, w2=w2, b2=b2, w3=w3, b3=b3, w4=w4, b4=b4, wt=wt)

    # Seasonality basis matrices (glue, computed once on host).
    b_ls, f_ls = _linspace(backcast_length, forecast_length)
    S_back = jnp.asarray(_seasonality_basis(thetas_dim, b_ls))   # (p, Lb)
    S_fore = jnp.asarray(_seasonality_basis(thetas_dim, f_ls))   # (p, Lf)

    x = jax.random.normal(ks[10], (B, backcast_length), jnp.float32)

    backcast, forecast = seasonality_block_forward(x, params, S_back, S_fore)
    jax.block_until_ready((backcast, forecast))

    # Check against the f32 reference (loose tolerance: bf16 MXU operands,
    # bf16 output store, folded theta/basis rounding order).
    ref_b, ref_f = _ref_forward(x, params, S_back, S_fore)
    np.testing.assert_allclose(np.asarray(backcast), np.asarray(ref_b),
                               rtol=5e-2, atol=2e-2)
    np.testing.assert_allclose(np.asarray(forecast), np.asarray(ref_f),
                               rtol=5e-2, atol=2e-2)

    print("KERNEL_OK")
</pallas_src>

<mosaic_0001>
module attributes {stable_mosaic.version = 11 : i64} {
  func.func @seasonality_block_kernel(%arg0: i32, %arg1: memref<8x40xbf16, #tpu.memory_space<vmem>>, %arg2: memref<40x128xbf16, #tpu.memory_space<vmem>>, %arg3: memref<1x128xf32, #tpu.memory_space<vmem>>, %arg4: memref<128x128xbf16, #tpu.memory_space<vmem>>, %arg5: memref<1x128xf32, #tpu.memory_space<vmem>>, %arg6: memref<128x128xbf16, #tpu.memory_space<vmem>>, %arg7: memref<1x128xf32, #tpu.memory_space<vmem>>, %arg8: memref<128x128xbf16, #tpu.memory_space<vmem>>, %arg9: memref<1x128xf32, #tpu.memory_space<vmem>>, %arg10: memref<128x60xbf16, #tpu.memory_space<vmem>>, %arg11: memref<8x60xbf16, #tpu.memory_space<vmem>>) attributes {dimension_semantics = [#tpu.dimension_semantics<parallel>], iteration_bounds = array<i64: 2>, scalar_prefetch = 0 : i64, scratch_operands = 0 : i64, tpu.core_type = #tpu.core_type<tc>, window_params = [{transform_indices = @transform_0, window_bounds = array<i64: 8, 40>}, {pipeline_mode = #tpu.pipeline_mode<synchronous>, transform_indices = @transform_1, window_bounds = array<i64: 40, 128>}, {pipeline_mode = #tpu.pipeline_mode<synchronous>, transform_indices = @transform_2, window_bounds = array<i64: 1, 128>}, {pipeline_mode = #tpu.pipeline_mode<synchronous>, transform_indices = @transform_3, window_bounds = array<i64: 128, 128>}, {pipeline_mode = #tpu.pipeline_mode<synchronous>, transform_indices = @transform_4, window_bounds = array<i64: 1, 128>}, {pipeline_mode = #tpu.pipeline_mode<synchronous>, transform_indices = @transform_5, window_bounds = array<i64: 128, 128>}, {pipeline_mode = #tpu.pipeline_mode<synchronous>, transform_indices = @transform_6, window_bounds = array<i64: 1, 128>}, {pipeline_mode = #tpu.pipeline_mode<synchronous>, transform_indices = @transform_7, window_bounds = array<i64: 128, 128>}, {pipeline_mode = #tpu.pipeline_mode<synchronous>, transform_indices = @transform_8, window_bounds = array<i64: 1, 128>}, {pipeline_mode = #tpu.pipeline_mode<synchronous>, transform_indices = @transform_9, window_bounds = array<i64: 128, 60>}, {transform_indices = @transform_10, window_bounds = array<i64: 8, 60>}]} {
    %c0 = arith.constant 0 : index
    %c0_0 = arith.constant 0 : index
    %0 = vector.load %arg1[%c0, %c0_0] : memref<8x40xbf16, #tpu.memory_space<vmem>>, vector<8x40xbf16>
    %c0_1 = arith.constant 0 : index
    %c0_2 = arith.constant 0 : index
    %1 = vector.load %arg2[%c0_1, %c0_2] : memref<40x128xbf16, #tpu.memory_space<vmem>>, vector<40x128xbf16>
    %cst = arith.constant dense<0.000000e+00> : vector<8x128xf32>
    %2 = tpu.matmul %0, %1, %cst {dimension_numbers = #tpu.dot_dimension_numbers<[1], [0], [0], [1], [0, 0, 1, 1], [], []>} : vector<8x40xbf16>, vector<40x128xbf16>, vector<8x128xf32> -> vector<8x128xf32>
    %c0_3 = arith.constant 0 : index
    %c0_4 = arith.constant 0 : index
    %3 = vector.load %arg3[%c0_3, %c0_4] : memref<1x128xf32, #tpu.memory_space<vmem>>, vector<1x128xf32>
    %4 = vector.broadcast %3 : vector<1x128xf32> to vector<8x128xf32>
    %5 = arith.addf %2, %4 : vector<8x128xf32>
    %cst_5 = arith.constant 0.000000e+00 : f32
    %6 = vector.broadcast %cst_5 : f32 to vector<8x128xf32>
    %7 = arith.maximumf %5, %6 : vector<8x128xf32>
    %8 = arith.truncf %7 : vector<8x128xf32> to vector<8x128xbf16>
    %c0_6 = arith.constant 0 : index
    %c0_7 = arith.constant 0 : index
    %9 = vector.load %arg4[%c0_6, %c0_7] : memref<128x128xbf16, #tpu.memory_space<vmem>>, vector<128x128xbf16>
    %cst_8 = arith.constant dense<0.000000e+00> : vector<8x128xf32>
    %10 = tpu.matmul %8, %9, %cst_8 {dimension_numbers = #tpu.dot_dimension_numbers<[1], [0], [0], [1], [0, 0, 1, 1], [], []>} : vector<8x128xbf16>, vector<128x128xbf16>, vector<8x128xf32> -> vector<8x128xf32>
    %c0_9 = arith.constant 0 : index
    %c0_10 = arith.constant 0 : index
    %11 = vector.load %arg5[%c0_9, %c0_10] : memref<1x128xf32, #tpu.memory_space<vmem>>, vector<1x128xf32>
    %12 = vector.broadcast %11 : vector<1x128xf32> to vector<8x128xf32>
    %13 = arith.addf %10, %12 : vector<8x128xf32>
    %cst_11 = arith.constant 0.000000e+00 : f32
    %14 = vector.broadcast %cst_11 : f32 to vector<8x128xf32>
    %15 = arith.maximumf %13, %14 : vector<8x128xf32>
    %16 = arith.truncf %15 : vector<8x128xf32> to vector<8x128xbf16>
    %c0_12 = arith.constant 0 : index
    %c0_13 = arith.constant 0 : index
    %17 = vector.load %arg6[%c0_12, %c0_13] : memref<128x128xbf16, #tpu.memory_space<vmem>>, vector<128x128xbf16>
    %cst_14 = arith.constant dense<0.000000e+00> : vector<8x128xf32>
    %18 = tpu.matmul %16, %17, %cst_14 {dimension_numbers = #tpu.dot_dimension_numbers<[1], [0], [0], [1], [0, 0, 1, 1], [], []>} : vector<8x128xbf16>, vector<128x128xbf16>, vector<8x128xf32> -> vector<8x128xf32>
    %c0_15 = arith.constant 0 : index
    %c0_16 = arith.constant 0 : index
    %19 = vector.load %arg7[%c0_15, %c0_16] : memref<1x128xf32, #tpu.memory_space<vmem>>, vector<1x128xf32>
    %20 = vector.broadcast %19 : vector<1x128xf32> to vector<8x128xf32>
    %21 = arith.addf %18, %20 : vector<8x128xf32>
    %cst_17 = arith.constant 0.000000e+00 : f32
    %22 = vector.broadcast %cst_17 : f32 to vector<8x128xf32>
    %23 = arith.maximumf %21, %22 : vector<8x128xf32>
    %24 = arith.truncf %23 : vector<8x128xf32> to vector<8x128xbf16>
    %c0_18 = arith.constant 0 : index
    %c0_19 = arith.constant 0 : index
    %25 = vector.load %arg8[%c0_18, %c0_19] : memref<128x128xbf16, #tpu.memory_space<vmem>>, vector<128x128xbf16>
    %cst_20 = arith.constant dense<0.000000e+00> : vector<8x128xf32>
    %26 = tpu.matmul %24, %25, %cst_20 {dimension_numbers = #tpu.dot_dimension_numbers<[1], [0], [0], [1], [0, 0, 1, 1], [], []>} : vector<8x128xbf16>, vector<128x128xbf16>, vector<8x128xf32> -> vector<8x128xf32>
    %c0_21 = arith.constant 0 : index
    %c0_22 = arith.constant 0 : index
    %27 = vector.load %arg9[%c0_21, %c0_22] : memref<1x128xf32, #tpu.memory_space<vmem>>, vector<1x128xf32>
    %28 = vector.broadcast %27 : vector<1x128xf32> to vector<8x128xf32>
    %29 = arith.addf %26, %28 : vector<8x128xf32>
    %cst_23 = arith.constant 0.000000e+00 : f32
    %30 = vector.broadcast %cst_23 : f32 to vector<8x128xf32>
    %31 = arith.maximumf %29, %30 : vector<8x128xf32>
    %32 = arith.truncf %31 : vector<8x128xf32> to vector<8x128xbf16>
    %c0_24 = arith.constant 0 : index
    %c0_25 = arith.constant 0 : index
    %33 = vector.load %arg10[%c0_24, %c0_25] : memref<128x60xbf16, #tpu.memory_space<vmem>>, vector<128x60xbf16>
    %cst_26 = arith.constant dense<0.000000e+00> : vector<8x60xf32>
    %34 = tpu.matmul %32, %33, %cst_26 {dimension_numbers = #tpu.dot_dimension_numbers<[1], [0], [0], [1], [0, 0, 1, 1], [], []>} : vector<8x128xbf16>, vector<128x60xbf16>, vector<8x60xf32> -> vector<8x60xf32>
    %35 = arith.truncf %34 : vector<8x60xf32> to vector<8x60xbf16>
    %c0_27 = arith.constant 0 : index
    %c0_28 = arith.constant 0 : index
    %36 = vector.load %arg11[%c0_27, %c0_28] : memref<8x60xbf16, #tpu.memory_space<vmem>>, vector<8x60xbf16>
    tpu.vector_store %arg11[%c0_27, %c0_28], %35 {strides = array<i32>} : memref<8x60xbf16, #tpu.memory_space<vmem>>, vector<8x60xbf16>,
    return
  }
  func.func @transform_0(%arg0: i32) -> (i32, i32) {
    %c0_i32 = arith.constant 0 : i32
    %c0_i32_0 = arith.constant 0 : i32
    return %arg0, %c0_i32 : i32, i32
  }
  func.func @transform_1(%arg0: i32) -> (i32, i32) {
    %c0_i32 = arith.constant 0 : i32
    %c0_i32_0 = arith.constant 0 : i32
    %c0_i32_1 = arith.constant 0 : i32
    return %c0_i32, %c0_i32_0 : i32, i32
  }
  func.func @transform_2(%arg0: i32) -> (i32, i32) {
    %c0_i32 = arith.constant 0 : i32
    %c0_i32_0 = arith.constant 0 : i32
    %c0_i32_1 = arith.constant 0 : i32
    return %c0_i32, %c0_i32_0 : i32, i32
  }
  func.func @transform_3(%arg0: i32) -> (i32, i32) {
    %c0_i32 = arith.constant 0 : i32
    %c0_i32_0 = arith.constant 0 : i32
    %c0_i32_1 = arith.constant 0 : i32
    return %c0_i32, %c0_i32_0 : i32, i32
  }
  func.func @transform_4(%arg0: i32) -> (i32, i32) {
    %c0_i32 = arith.constant 0 : i32
    %c0_i32_0 = arith.constant 0 : i32
    %c0_i32_1 = arith.constant 0 : i32
    return %c0_i32, %c0_i32_0 : i32, i32
  }
  func.func @transform_5(%arg0: i32) -> (i32, i32) {
    %c0_i32 = arith.constant 0 : i32
    %c0_i32_0 = arith.constant 0 : i32
    %c0_i32_1 = arith.constant 0 : i32
    return %c0_i32, %c0_i32_0 : i32, i32
  }
  func.func @transform_6(%arg0: i32) -> (i32, i32) {
    %c0_i32 = arith.constant 0 : i32
    %c0_i32_0 = arith.constant 0 : i32
    %c0_i32_1 = arith.constant 0 : i32
    return %c0_i32, %c0_i32_0 : i32, i32
  }
  func.func @transform_7(%arg0: i32) -> (i32, i32) {
    %c0_i32 = arith.constant 0 : i32
    %c0_i32_0 = arith.constant 0 : i32
    %c0_i32_1 = arith.constant 0 : i32
    return %c0_i32, %c0_i32_0 : i32, i32
  }
  func.func @transform_8(%arg0: i32) -> (i32, i32) {
    %c0_i32 = arith.constant 0 : i32
    %c0_i32_0 = arith.constant 0 : i32
    %c0_i32_1 = arith.constant 0 : i32
    return %c0_i32, %c0_i32_0 : i32, i32
  }
  func.func @transform_9(%arg0: i32) -> (i32, i32) {
    %c0_i32 = arith.constant 0 : i32
    %c0_i32_0 = arith.constant 0 : i32
    %c0_i32_1 = arith.constant 0 : i32
    return %c0_i32, %c0_i32_0 : i32, i32
  }
  func.func @transform_10(%arg0: i32) -> (i32, i32) {
    %c0_i32 = arith.constant 0 : i32
    %c0_i32_0 = arith.constant 0 : i32
    return %arg0, %c0_i32 : i32, i32
  }
}

</mosaic_0001>

<bundles_post_ra>
// kernel: tpu_custom_call.1
= control target key start
LH: loop header
LB: loop body
LE: loop exit
PB: predicated region body
PF: predicated region fallthrough
CT: control target
= control target key end

     0   :  { %s1485_s0 = inlined_call_operand.vmem [shape: bf16[16,40], index: 0, kind: input, shape index: {}]   ;;  %s1486_s1 = inlined_call_operand.vmem [shape: bf16[40,128], index: 1, kind: input, shape index: {}]   ;;  %s1487_s2 = inlined_call_operand.vmem [shape: f32[1,128], index: 2, kind: input, shape index: {}]   ;;  %s1488_s3 = inlined_call_operand.vmem [shape: bf16[128,128], index: 3, kind: input, shape index: {}]   ;;  %s1489_s4 = inlined_call_operand.vmem [shape: f32[1,128], index: 4, kind: input, shape index: {}]   ;;  %s1490_s5 = inlined_call_operand.hbm [shape: bf16[128,128], index: 5, kind: input, shape index: {}]   ;;  %s1491_s6 = inlined_call_operand.vmem [shape: f32[1,128], index: 6, kind: input, shape index: {}]   ;;  %s1492_s7 = inlined_call_operand.hbm [shape: bf16[128,128], index: 7, kind: input, shape index: {}]   ;;  %s1493_s8 = inlined_call_operand.vmem [shape: f32[1,128], index: 8, kind: input, shape index: {}]   ;;  %s1494_s9 = inlined_call_operand.vmem [shape: bf16[128,60], index: 9, kind: input, shape index: {}]   ;;  %s1495_s10 = inlined_call_operand.hbm [shape: bf16[16,60], index: 10, kind: output, shape index: {}]  }
   0x1   :  { %1496 = sst [smem:[#allocation12_spill]] %s1490_s5 }
   0x2   :  { %15 = vsyncpa [#allocation3], 0 }
   0x3   :  { %16 = vsyncpa [#allocation6], 0 }
   0x4   :  { %17 = vsyncpa [#allocation4], 0 }
   0x5   :  { %19 = vsyncpa [#allocation4 + $0x1], 0  ;;  %s1306_s13 = smov 0   ;;  %s1308_s14 = smov 0  }
   0x6   :  { %s1310_s15 = smov 0   ;;  %s1312_s16 = smov 0  }
   0x7 LB: > { %s1327_s17 = sadd.s32 4294967295, %s1245_s16   ;;  %s864_s18 = sadd.s32 4294967294, %s1245_s16   ;;  %s1245_s16 = sphi %s1312_s16, %s1506_s16   ;;  %s1241_s15 = sphi %s1310_s15, %s1505_s15   ;;  %s1237_s14 = sphi %s1308_s14, %s1504_s14   ;;  %s1233_s13 = sphi %s1306_s13, %s1503_s13  }
   0x8   : > { %s1331_s19 = sadd.s32 1, %s1245_s16   ;;  %s247_s20 = sadd.s32 1, %s1241_s15 }
   0x9   : > { %s244_s21 = ssub.s32 %s1245_s16, %s1331_s19  ;;  %p257_p0 = scmp.ne.s32.totalorder %s1241_s15, %s1237_s14 }
   0xa   : > { %p245_p1 = scmp.eq.s32.totalorder %s244_s21, 0  ;;  %p258_p2 = scmp.eq.s32.totalorder %s1327_s17, 1 }
   0xb   : > { %p263_p3 = scmp.ne.s32.totalorder %s1237_s14, %s1233_s13  ;;  %p264_p4 = scmp.eq.s32.totalorder %s864_s18, 1 }
   0xc   : > { %s1342_s22 = scalar_select %p245_p1, %s1241_s15, %s247_s20  }
   0xd   : > { %p1344_p5 = por %p258_p2, %p257_p0  ;;  %p1348_p6 = por %p264_p4, %p263_p3 }
   0xe   : > { %1497 = sst [smem:[#allocation11_spill]] %s1342_s22  ;;  %p865_p7 = scmp.ge.s32.totalorder %s1245_s16, 1 }
   0xf   : > { %p271_p8 = scmp.lt.s32.totalorder %s1245_s16, 3  ;;  %p1070_p9 = scmp.eq.s32.totalorder %s1327_s17, 0 }
  0x10   : > { %s1501_s5 = sld [smem:[#allocation12_spill]]  ;;  %s1247_s29 = smov [#allocation2]  }
  0x11   : > { %p1355_p10 = pnand %p865_p7, %p271_p8  ;;  %s296_s30 = sshll.u32 %s1247_s29, 4  ;;  %s297_s30 = int_to_ptr.vmem [resolvable:$true] %s296_s30 }
  0x12   : > { %s311_s18 = sshll.u32 %s1492_s7, 4  ;;  %s1248_s20 = smov 64   ;;  %s312_s18 = int_to_ptr.hbm [resolvable:$true] %s311_s18 }
  0x13   : > { %p1059_p11 = pneg %p1355_p10  ;;  %s1249_s21 = smov 4  }
  0x14   : > { %s1250_s22 = smov [#allocation5]   ;;  %342 = sbr.rel (%p1355_p10) target bundleno = 719 (0x2cf), region = 60 }
  0x15   : > { %p1060_p12 = pnand %p1070_p9, %p1059_p11  ;;  %s313_s26 = sshll.u32 %s1250_s22, 4  ;;  %s314_s26 = int_to_ptr.vmem [resolvable:$true] %s313_s26 }
  0x16   : > { %s294_s28 = sshll.u32 %s1501_s5, 4  ;;  %s295_s28 = int_to_ptr.hbm [resolvable:$true] %s294_s28 }
  0x17   : > { %1062 = dma.hbm_to_vmem [thread:$0]  (!%p1060_p12), %s295_s28, 1024, %s297_s30, [#allocation3], %s1248_s20, %s1248_s20, %s1249_s21  }
  0x18   : > { %1065 = dma.hbm_to_vmem [thread:$0]  (!%p1060_p12), %s312_s18, 1024, %s314_s26, [#allocation6], %s1248_s20, %s1248_s20, %s1249_s21  }
  0x19   : > { %1220 = dma.done.wait (%p1070_p9), [#allocation3], 1024  }
  0x1a   : > { %1222 = vsyncadd (%p1070_p9), [#allocation3], 4294966272 }
  0x1b   : > { %1224 = dma.done.wait (%p1070_p9), [#allocation6], 1024  }
  0x1c   : > { %1226 = vsyncadd (%p1070_p9), [#allocation6], 4294966272  ;;  %p385_p13 = scmp.lt.s32.totalorder %s1327_s17, 1  ;;  %v395_v0 = vld [vmem:[%s1486_s1 + $0x10] sm:$0xf]  ;;  %v1024_v2 = vld [vmem:[%s1488_s3 + $0x38] sm:$0xff] }
  0x1d   : > { %v409_v1 = vunpack.c.l.b16 %v395_v0  ;;  %vm419_vm0 = vcmask 1043456   ;;  %506 = vmatpush.bf16.msra.mxu1 %v1024_v2  ;;  %v1023_v4 = vld [vmem:[%s1488_s3 + $0x30] sm:$0xff]  ;;  %v1016_v6 = vld [vmem:[%s1486_s1 + $0x8] sm:$0xff]  ;;  %v1015_v8 = vld [vmem:[%s1486_s1] sm:$0xff]  ;;  %vm415_vm1 = vcmask 326656   ;;  %s382_s5 = sand.u32 1, %s1237_s14  }
  0x1e   : > { %s386_s29 = scalar_select %p385_p13, %s1327_s17, 1  ;;  %v1022_v7 = vld [vmem:[%s1488_s3 + $0x28] sm:$0xff]  ;;  %v1021_v9 = vld [vmem:[%s1488_s3 + $0x20] sm:$0xff]  ;;  %v1020_v11 = vld [vmem:[%s1488_s3 + $0x18] sm:$0xff]  ;;  %vm765_vm2 = vcmask 486400  }
  0x1f   : > { %v412_v3 = vpack.c.b16 %v409_v1, %v409_v1  ;;  %v1019_v12 = vld [vmem:[%s1488_s3 + $0x10] sm:$0xff]  ;;  %v1018_v13 = vld [vmem:[%s1488_s3 + $0x8] sm:$0xff]  ;;  %v1017_v14 = vld [vmem:[%s1488_s3] sm:$0xff]  ;;  %s1012_s22 = sshll.u32 %s1327_s17, 2  ;;  %s872_s27 = sshll.u32 %s382_s5, 2 }
  0x20   : > { %s873_s26 = sshll.u32 %s386_s29, 2  ;;  %v1032_v15 = vld [vmem:[#allocation2 + $0x38] sm:$0xff]  ;;  %v1031_v16 = vld [vmem:[#allocation2 + $0x30] sm:$0xff]  ;;  %v1030_v17 = vld [vmem:[#allocation2 + $0x28] sm:$0xff]  ;;  %s384_s11 = scalar_lea.vmem [#allocation7], %s872_s27 }
  0x21   : > { %v421_v5 = vsel %vm419_vm0, %v412_v3, 0  ;;  %507 = vmatpush.bf16.msra.mxu1 %v1023_v4  ;;  %s388_s30 = scalar_lea.vmem %s1485_s0, %s873_s26  ;;  %589 = vmatpush.bf16.msra.mxu2 %v1032_v15  ;;  %v1029_v18 = vld [vmem:[#allocation2 + $0x20] sm:$0xff]  ;;  %v1028_v19 = vld [vmem:[#allocation2 + $0x18] sm:$0xff]  ;;  %v1027_v20 = vld [vmem:[#allocation2 + $0x10] sm:$0xff]  ;;  %s780_s12 = sshll.u32 %s384_s11, 4  ;;  %s781_s12 = int_to_ptr.vmem [resolvable:$true] %s780_s12 }
  0x22   : > { %428 = vmatpush.bf16.msra.mxu0 %v421_v5  ;;  %v390_v10 = vld [vmem:[%s388_s30] sm:$0xf]  ;;  %v1026_v27 = vld [vmem:[#allocation2 + $0x8] sm:$0xff]  ;;  %v1040_v29 = vld [vmem:[#allocation5 + $0x38] sm:$0xff]  ;;  %s778_s30 = scalar_lea.hbm %s1495_s10, %s1012_s22  ;;  %s768_s18 = scalar_lea.sflag [#allocation4], %s382_s5 }
  0x23   : > { %v1111_v21 = vld [vmem:[%s1487_s2] ss:$0 sm:$0xff]  ;;  %672 = vmatpush.bf16.msra.mxu3 %v1040_v29  ;;  %v1039_v30 = vld [vmem:[#allocation5 + $0x30] sm:$0xff]  ;;  %v1038_v31 = vld [vmem:[#allocation5 + $0x28] sm:$0xff]  ;;  %s782_s29 = sshll.u32 %s778_s30, 4  ;;  %s1195_s22 = scalar_lea.hbm %s1495_s10, 8  ;;  %s783_s29 = int_to_ptr.hbm [resolvable:$true] %s782_s29 }
  0x24   : > { %v1025_v28 = vld [vmem:[#allocation2] sm:$0xff]  ;;  %v1036_v33 = vld [vmem:[#allocation5 + $0x18] sm:$0xff]  ;;  %v1035_v34 = vld [vmem:[#allocation5 + $0x10] sm:$0xff]  ;;  %s1189_s20 = sshra.s32 %s783_s29, 4  ;;  %s1190_s20 = int_to_ptr.hbm [resolvable:$true] %s1189_s20 }
  0x25   : > { %508 = vmatpush.bf16.msra.mxu1 %v1022_v7  ;;  %590 = vmatpush.bf16.msra.mxu2 %v1031_v16  ;;  %v1037_v32 = vld [vmem:[#allocation5 + $0x20] sm:$0xff]  ;;  %v1034_v41 = vld [vmem:[#allocation5 + $0x8] sm:$0xff]  ;;  %v1048_v43 = vld [vmem:[%s1494_s9 + $0x38] sm:$0xff]  ;;  %s1191_s21 = scalar_lea.hbm %s1190_s20, 4  ;;  %p1196_p3 = scmp.lt.s32.totalorder %s1190_s20, %s1495_s10 }
  0x26   : > { %429 = vmatpush.bf16.msra.mxu0 %v1016_v6  ;;  %v1112_v35 = vld [vmem:[%s1489_s4] ss:$0 sm:$0xff]  ;;  %v1047_v44 = vld [vmem:[%s1494_s9 + $0x30] sm:$0xff]  ;;  %v1046_v45 = vld [vmem:[%s1494_s9 + $0x28] sm:$0xff]  ;;  %p1192_p0 = scmp.ne.s32.totalorder %s1190_s20, %s1191_s21  ;;  %p1197_p4 = scmp.lt.s32.totalorder %s1195_s22, %s1191_s21 }
  0x27   : > { %673 = vmatpush.bf16.msra.mxu3 %v1039_v30  ;;  %v1033_v42 = vld [vmem:[#allocation5] sm:$0xff]  ;;  %v1044_v47 = vld [vmem:[%s1494_s9 + $0x18] sm:$0xff]  ;;  %v1043_v48 = vld [vmem:[%s1494_s9 + $0x10] sm:$0xff] }
  0x28   : > { %v1045_v46 = vld [vmem:[%s1494_s9 + $0x20] sm:$0xff]  ;;  %v1042_v55 = vld [vmem:[%s1494_s9 + $0x8] sm:$0xff]  ;;  %p1193_p1 = pnand %p1192_p0, %p1344_p5  ;;  %p1198_p7 = por %p1197_p4, %p1196_p3 }
  0x29   : > { %509 = vmatpush.bf16.msra.mxu1 %v1021_v9  ;;  %591 = vmatpush.bf16.msra.mxu2 %v1030_v17  ;;  %v1113_v49 = vld [vmem:[%s1491_s6] ss:$0 sm:$0xff] }
  0x2a   : > { %430 = vmatpush.bf16.msra.mxu0 %v1015_v8  ;;  %v1041_v56 = vld [vmem:[%s1494_s9] sm:$0xff]  ;;  %p1194_p2 = pneg %p1193_p1 }
  0x2b   : > { %674 = vmatpush.bf16.msra.mxu3 %v1038_v31  ;;  %v1114_v57 = vld [vmem:[%s1493_s8] ss:$0 sm:$0xff] }
  0x2c   : > { %p1199_p8 = pnand %p1198_p7, %p1194_p2 }
  0x2d   : > { %882 = vmatmul.msk.bf16.vlgmr.msra.gmra.mxu0 %vm415_vm1, %v390_v10  ;;  %510 = vmatpush.bf16.msra.mxu1 %v1020_v11 }
  0x2e   : > { %592 = vmatpush.bf16.msra.mxu2 %v1029_v18  ;;  %751 = vmatpush.bf16.msrb.mxu0 %v1048_v43 }
  0x2f   : > { %675 = vmatpush.bf16.msra.mxu3 %v1037_v32 }
  0x31   : > { %511 = vmatpush.bf16.msra.mxu1 %v1019_v12 }
  0x32   : > { %593 = vmatpush.bf16.msra.mxu2 %v1028_v19  ;;  %752 = vmatpush.bf16.msrb.mxu0 %v1047_v44 }
  0x33   : > { %676 = vmatpush.bf16.msra.mxu3 %v1036_v33 }
  0x35   : > { %512 = vmatpush.bf16.msra.mxu1 %v1018_v13 }
  0x36   : > { %594 = vmatpush.bf16.msra.mxu2 %v1027_v20  ;;  %753 = vmatpush.bf16.msrb.mxu0 %v1046_v45 }
  0x37   : > { %677 = vmatpush.bf16.msra.mxu3 %v1035_v34 }
  0x39   : > { %513 = vmatpush.bf16.msra.mxu1 %v1017_v14 }
  0x3a   : > { %595 = vmatpush.bf16.msra.mxu2 %v1026_v27  ;;  %754 = vmatpush.bf16.msrb.mxu0 %v1045_v46 }
  0x3b   : > { %678 = vmatpush.bf16.msra.mxu3 %v1034_v41 }
  0x3e   : > { %596 = vmatpush.bf16.msra.mxu2 %v1025_v28  ;;  %755 = vmatpush.bf16.msrb.mxu0 %v1044_v47 }
  0x3f   : > { %679 = vmatpush.bf16.msra.mxu3 %v1033_v42 }
  0x42   : > { %756 = vmatpush.bf16.msrb.mxu0 %v1043_v48 }
  0x46   : > { %757 = vmatpush.bf16.msrb.mxu0 %v1042_v55 }
  0x4a   : > { %758 = vmatpush.bf16.msrb.mxu0 %v1041_v56 }
  0xaa   : > { %v432_v22 = vpop.f32.mrf.mxu0 }
  0xab   : > { %v433_v23 = vadd.f32 %v1111_v21, %v432_v22 }
  0xad   : > { %v436_v24 = vmax.f32 %v433_v23, 0.0 }
  0xaf   : > { %v437_v25 = vpack.c.bf16 %v436_v24, %v436_v24 }
  0xb1   : > { %514 = vmatmul.bf16.vlgmr.msra.gmra.mxu1 %v437_v25 }
  0xb2   : > { %v434_v26 = vpop.f32.mrf.mxu0 }
 0x12e   : > { %v515_v36 = vpop.f32.mrf.mxu1 }
 0x12f   : > { %v516_v37 = vadd.f32 %v1112_v35, %v515_v36 }
 0x131   : > { %v519_v38 = vmax.f32 %v516_v37, 0.0 }
 0x133   : > { %v520_v39 = vpack.c.bf16 %v519_v38, %v519_v38 }
 0x135   : > { %597 = vmatmul.bf16.vlgmr.msra.gmra.mxu2 %v520_v39 }
 0x136   : > { %v517_v40 = vpop.f32.mrf.mxu1 }
 0x1b8   : > { %v598_v50 = vpop.f32.mrf.mxu2 }
 0x1b9   : > { %v599_v51 = vadd.f32 %v1113_v49, %v598_v50 }
 0x1bb   : > { %v602_v52 = vmax.f32 %v599_v51, 0.0 }
 0x1bd   : > { %v603_v53 = vpack.c.bf16 %v602_v52, %v602_v52 }
 0x1bf   : > { %680 = vmatmul.bf16.vlgmr.msra.gmra.mxu3 %v603_v53 }
 0x1c0   : > { %v600_v54 = vpop.f32.mrf.mxu2 }
 0x242   : > { %v681_v58 = vpop.f32.mrf.mxu3 }
 0x243   : > { %v682_v59 = vadd.f32 %v1114_v57, %v681_v58 }
 0x245   : > { %v685_v60 = vmax.f32 %v682_v59, 0.0 }
 0x247   : > { %v686_v61 = vpack.c.bf16 %v685_v60, %v685_v60 }
 0x249   : > { %759 = vmatmul.bf16.vlgmr.msrb.gmra.mxu0 %v686_v61 }
 0x24a   : > { %v683_v62 = vpop.f32.mrf.mxu3 }
 0x2c6   : > { %v760_v63 = vpop.f32.mrf.mxu0 }
 0x2c7   : > { %v764_v0 = vpack.c.bf16 %v760_v63, %v760_v63 }
 0x2c9   : > { %766 = vst.msk [vmem:[%s384_s11] sm:$0xf] %vm765_vm2, %v764_v0 }
 0x2ca   : > { %1202 = shalt.err (!%p1199_p8)
}
 0x2cb   : > { %1057 = dma.vmem_to_hbm [thread:$0]  (%p1344_p5), %s781_s12, 64, %s783_s29, %s768_s18  }
 0x2ce   : > { %v762_v1 = vpop.f32.mrf.mxu0 }
 0x2cf PF: > { %p1074_p9 = scmp.ge.s32.totalorder %s1245_s16, 2  ;;  %s794_s5 = sand.u32 1, %s1233_s13  }
 0x2d0   : > { %s795_s28 = scalar_lea.sflag [#allocation4], %s794_s5 }
 0x2d1   : > { %p1067_p10 = pnand %p1074_p9, %p1348_p6 }
 0x2d3   : > { %p1068_p11 = pneg %p1067_p10 }
 0x2d5   : > { %1228 = dma.done.wait (%p1068_p11), %s795_s28, 64  }
 0x2d6   : > { %1230 = vsyncadd (%p1068_p11), %s795_s28, 4294967232  ;;  %s1502_s30 = sld [smem:[#allocation11_spill]]  ;;  %p22_p12 = scmp.ge.s32.totalorder %s1331_s19, 4  }
 0x2d7   : > { %s1503_s13 = smov %s1237_s14  ;;  %s1504_s14 = smov %s1241_s15 }
 0x2d8   : > { %s1506_s16 = smov %s1331_s19  ;;  %24 = sbr.rel (!%p22_p12) target bundleno = 7 (0x7), region = 104 }
 0x2dc   : > { %s1505_s15 = smov %s1502_s30 }
 0x2dd   :  { %801 = vsyncpa [#allocation3], 1 }
 0x2de   :  { %803 = vsyncpa [#allocation3 + $0x1], 1 }
 0x2df   :  { %804 = vsyncpa [#allocation6], 1 }
 0x2e0   :  { %805 = vsyncpa [#allocation4], 1 }
 0x2e1   :  { %807 = vsyncpa [#allocation4 + $0x1], 1 }

</bundles_post_ra>
